<compile_context>
chip_gen: v7x
topology: tpu7x:2x2x1
jax: 0.10.0
libtpu: 0.0.40
codegen_flags: <defaults>
</compile_context>

<pallas_src>
import jax
import jax.numpy as jnp
from jax.experimental import pallas as pl
from jax.experimental.pallas import tpu as pltpu

K_IN, H1, H2, N_OUT = 784, 128, 64, 10      # logical dims (PyTorch module)
K_PAD, N_PAD = 896, 128                     # lane-dense padded dims (multiples of 128)


def mlp_kernel(x_ref, w1_ref, b1_ref, w2_ref, b2_ref, w3_ref, b3_ref, out_ref):
    # x_ref: [TB, K_PAD] tile; weights/biases are full (padded) arrays, VMEM-resident.
    x = x_ref[...]

    # fc1 + ReLU  (MXU matmul, f32 accumulation)
    h1 = jnp.dot(x, w1_ref[...], preferred_element_type=jnp.float32) + b1_ref[...]
    h1 = jnp.maximum(h1, 0.0)

    # fc2 + ReLU  (output padded 64 -> 128 lanes; pad columns are exactly 0)
    h2 = jnp.dot(h1, w2_ref[...], preferred_element_type=jnp.float32) + b2_ref[...]
    h2 = jnp.maximum(h2, 0.0)

    # fc3 logits  (padded 10 -> 128 lanes; pad columns are exactly 0)
    out = jnp.dot(h2, w3_ref[...], preferred_element_type=jnp.float32) + b3_ref[...]
    out_ref[...] = out.astype(out_ref.dtype)


def _choose_batch_tile(batch):
    # ~2048 rows -> 7 MiB x-tile (f32), comfortably double-buffered under the
    # default scoped-VMEM limit on every TPU generation (incl. v7x's 64 MiB VMEM).
    if batch >= 2048:
        return 2048
    return max(8, ((batch + 7) // 8) * 8)   # keep sublane (8) alignment for small B


def mlp_forward(x_nchw, params, tb=None):
    """x_nchw: [B, 1, 28, 28] float32 -> logits [B, 10] float32."""
    w1, b1, w2, b2, w3, b3 = params
    B = x_nchw.shape[0]
    x = x_nchw.reshape(B, -1).astype(jnp.float32)        # nn.Flatten (row-major)

    # ---- zero-padding to lane-dense shapes (exact math: padded terms are 0) ----
    x = jnp.pad(x, ((0, 0), (0, K_PAD - K_IN)))           # [B, 896]
    w1p = jnp.pad(w1, ((0, K_PAD - K_IN), (0, 0)))         # [896, 128]
    b1p = b1                                               # [1, 128]
    w2p = jnp.pad(w2, ((0, 0), (0, N_PAD - H2)))           # [128, 128]
    b2p = jnp.pad(b2, ((0, 0), (0, N_PAD - H2)))           # [1, 128]
    w3p = jnp.pad(w3, ((0, N_PAD - H2), (0, N_PAD - N_OUT)))  # [128, 128]
    b3p = jnp.pad(b3, ((0, 0), (0, N_PAD - N_OUT)))        # [1, 128]

    # ---- batch tiling (pad ragged last tile with zero rows, sliced away below) ----
    if tb is None:
        tb = _choose_batch_tile(B)
    n_tiles = pl.cdiv(B, tb)
    B_pad = n_tiles * tb
    if B_pad != B:
        x = jnp.pad(x, ((0, B_pad - B), (0, 0)))

    const2d = lambda i: (0, 0)  # weights/biases: same block every grid step (stay resident)

    flops = 2 * B_pad * (K_PAD * H1 + H1 * N_PAD + N_PAD * N_PAD)
    bytes_accessed = 4 * (
        B_pad * (K_PAD + N_PAD)                               # x stream + logits stream
        + K_PAD * H1 + H1 * N_PAD + N_PAD * N_PAD + 3 * N_PAD  # weights + biases (once)
    )

    out = pl.pallas_call(
        mlp_kernel,
        out_shape=jax.ShapeDtypeStruct((B_pad, N_PAD), jnp.float32),
        grid=(n_tiles,),
        in_specs=[
            pl.BlockSpec((tb, K_PAD), lambda i: (i, 0)),   # x tile (pipelined)
            pl.BlockSpec((K_PAD, H1), const2d),            # w1
            pl.BlockSpec((1, H1), const2d),                # b1
            pl.BlockSpec((H1, N_PAD), const2d),            # w2 (padded)
            pl.BlockSpec((1, N_PAD), const2d),             # b2 (padded)
            pl.BlockSpec((N_PAD, N_PAD), const2d),         # w3 (padded)
            pl.BlockSpec((1, N_PAD), const2d),             # b3 (padded)
        ],
        out_specs=pl.BlockSpec((tb, N_PAD), lambda i: (i, 0)),
        compiler_params=pltpu.CompilerParams(
            dimension_semantics=("parallel",),             # megacore on v7x; no-op on v5e/v6e
        ),
        cost_estimate=pl.CostEstimate(
            flops=flops, transcendentals=0, bytes_accessed=bytes_accessed),
    )(x, w1p, b1p, w2p, b2p, w3p, b3p)

    return out[:B, :N_OUT]


def init_params(key):
    """Deterministic init matching PyTorch nn.Linear default:
    U(-1/sqrt(fan_in), 1/sqrt(fan_in)) for both weight and bias.
    Weights stored as [in_features, out_features] (y = x @ W + b == torch x @ W.T + b)."""
    dims = [(K_IN, H1), (H1, H2), (H2, N_OUT)]
    params = []
    for fan_in, fan_out in dims:
        kw, kb, key = jax.random.split(key, 3)
        bound = 1.0 / (fan_in ** 0.5)
        w = jax.random.uniform(kw, (fan_in, fan_out), jnp.float32, -bound, bound)
        b = jax.random.uniform(kb, (1, fan_out), jnp.float32, -bound, bound)
        params += [w, b]
    return params


def reference_forward(x_nchw, params):
    """Plain-JAX reference for correctness checking (unpadded math)."""
    w1, b1, w2, b2, w3, b3 = params
    x = x_nchw.reshape(x_nchw.shape[0], -1)
    h1 = jnp.maximum(x @ w1 + b1, 0.0)
    h2 = jnp.maximum(h1 @ w2 + b2, 0.0)
    return h2 @ w3 + b3


if __name__ == "__main__":
    key = jax.random.PRNGKey(0)
    kx, kp = jax.random.split(key)

    batch = 2
    x = jax.random.normal(kx, (batch, 1, 28, 28), jnp.float32)
    params = init_params(kp)

    logits = mlp_forward(x, params)
    jax.block_until_ready(logits)

    ref = reference_forward(x, params)
    assert logits.shape == (batch, 10), logits.shape
    assert jnp.allclose(logits, ref, atol=1e-4, rtol=1e-4), "mismatch vs reference"

    # Also exercise a batch that is not a multiple of the tile size (ragged last tile).
    batch2 = 37
    x2 = jax.random.normal(kx, (batch2, 1, 28, 28), jnp.float32)
    logits2 = mlp_forward(x2, params)
    jax.block_until_ready(logits2)
    ref2 = reference_forward(x2, params)
    assert logits2.shape == (batch2, 10)
    assert jnp.allclose(logits2, ref2, atol=1e-4, rtol=1e-4), "mismatch vs reference (ragged batch)"

    print("KERNEL_OK")
</pallas_src>

<mosaic_0001>
module attributes {stable_mosaic.version = 11 : i64} {
  func.func @mlp_kernel(%arg0: i32, %arg1: memref<8x896xf32, #tpu.memory_space<vmem>>, %arg2: memref<896x128xf32, #tpu.memory_space<vmem>>, %arg3: memref<1x128xf32, #tpu.memory_space<vmem>>, %arg4: memref<128x128xf32, #tpu.memory_space<vmem>>, %arg5: memref<1x128xf32, #tpu.memory_space<vmem>>, %arg6: memref<128x128xf32, #tpu.memory_space<vmem>>, %arg7: memref<1x128xf32, #tpu.memory_space<vmem>>, %arg8: memref<8x128xf32, #tpu.memory_space<vmem>>) attributes {dimension_semantics = [#tpu.dimension_semantics<parallel>], iteration_bounds = array<i64: 1>, scalar_prefetch = 0 : i64, scratch_operands = 0 : i64, tpu.core_type = #tpu.core_type<tc>, window_params = [{transform_indices = @transform_0, window_bounds = array<i64: 8, 896>}, {pipeline_mode = #tpu.pipeline_mode<synchronous>, transform_indices = @transform_1, window_bounds = array<i64: 896, 128>}, {pipeline_mode = #tpu.pipeline_mode<synchronous>, transform_indices = @transform_2, window_bounds = array<i64: 1, 128>}, {pipeline_mode = #tpu.pipeline_mode<synchronous>, transform_indices = @transform_3, window_bounds = array<i64: 128, 128>}, {pipeline_mode = #tpu.pipeline_mode<synchronous>, transform_indices = @transform_4, window_bounds = array<i64: 1, 128>}, {pipeline_mode = #tpu.pipeline_mode<synchronous>, transform_indices = @transform_5, window_bounds = array<i64: 128, 128>}, {pipeline_mode = #tpu.pipeline_mode<synchronous>, transform_indices = @transform_6, window_bounds = array<i64: 1, 128>}, {transform_indices = @transform_7, window_bounds = array<i64: 8, 128>}]} {
    %c0 = arith.constant 0 : index
    %c0_0 = arith.constant 0 : index
    %0 = vector.load %arg1[%c0, %c0_0] : memref<8x896xf32, #tpu.memory_space<vmem>>, vector<8x896xf32>
    %c0_1 = arith.constant 0 : index
    %c0_2 = arith.constant 0 : index
    %1 = vector.load %arg2[%c0_1, %c0_2] : memref<896x128xf32, #tpu.memory_space<vmem>>, vector<896x128xf32>
    %cst = arith.constant dense<0.000000e+00> : vector<8x128xf32>
    %2 = tpu.matmul %0, %1, %cst {dimension_numbers = #tpu.dot_dimension_numbers<[1], [0], [0], [1], [0, 0, 1, 1], [], []>} : vector<8x896xf32>, vector<896x128xf32>, vector<8x128xf32> -> vector<8x128xf32>
    %c0_3 = arith.constant 0 : index
    %c0_4 = arith.constant 0 : index
    %3 = vector.load %arg3[%c0_3, %c0_4] : memref<1x128xf32, #tpu.memory_space<vmem>>, vector<1x128xf32>
    %4 = vector.broadcast %3 : vector<1x128xf32> to vector<8x128xf32>
    %5 = arith.addf %2, %4 : vector<8x128xf32>
    %cst_5 = arith.constant 0.000000e+00 : f32
    %6 = vector.broadcast %cst_5 : f32 to vector<8x128xf32>
    %7 = arith.maximumf %5, %6 : vector<8x128xf32>
    %c0_6 = arith.constant 0 : index
    %c0_7 = arith.constant 0 : index
    %8 = vector.load %arg4[%c0_6, %c0_7] : memref<128x128xf32, #tpu.memory_space<vmem>>, vector<128x128xf32>
    %cst_8 = arith.constant dense<0.000000e+00> : vector<8x128xf32>
    %9 = tpu.matmul %7, %8, %cst_8 {dimension_numbers = #tpu.dot_dimension_numbers<[1], [0], [0], [1], [0, 0, 1, 1], [], []>} : vector<8x128xf32>, vector<128x128xf32>, vector<8x128xf32> -> vector<8x128xf32>
    %c0_9 = arith.constant 0 : index
    %c0_10 = arith.constant 0 : index
    %10 = vector.load %arg5[%c0_9, %c0_10] : memref<1x128xf32, #tpu.memory_space<vmem>>, vector<1x128xf32>
    %11 = vector.broadcast %10 : vector<1x128xf32> to vector<8x128xf32>
    %12 = arith.addf %9, %11 : vector<8x128xf32>
    %cst_11 = arith.constant 0.000000e+00 : f32
    %13 = vector.broadcast %cst_11 : f32 to vector<8x128xf32>
    %14 = arith.maximumf %12, %13 : vector<8x128xf32>
    %c0_12 = arith.constant 0 : index
    %c0_13 = arith.constant 0 : index
    %15 = vector.load %arg6[%c0_12, %c0_13] : memref<128x128xf32, #tpu.memory_space<vmem>>, vector<128x128xf32>
    %cst_14 = arith.constant dense<0.000000e+00> : vector<8x128xf32>
    %16 = tpu.matmul %14, %15, %cst_14 {dimension_numbers = #tpu.dot_dimension_numbers<[1], [0], [0], [1], [0, 0, 1, 1], [], []>} : vector<8x128xf32>, vector<128x128xf32>, vector<8x128xf32> -> vector<8x128xf32>
    %c0_15 = arith.constant 0 : index
    %c0_16 = arith.constant 0 : index
    %17 = vector.load %arg7[%c0_15, %c0_16] : memref<1x128xf32, #tpu.memory_space<vmem>>, vector<1x128xf32>
    %18 = vector.broadcast %17 : vector<1x128xf32> to vector<8x128xf32>
    %19 = arith.addf %16, %18 : vector<8x128xf32>
    %c0_17 = arith.constant 0 : index
    %c0_18 = arith.constant 0 : index
    %20 = vector.load %arg8[%c0_17, %c0_18] : memref<8x128xf32, #tpu.memory_space<vmem>>, vector<8x128xf32>
    tpu.vector_store %arg8[%c0_17, %c0_18], %19 {strides = array<i32>} : memref<8x128xf32, #tpu.memory_space<vmem>>, vector<8x128xf32>,
    return
  }
  func.func @transform_0(%arg0: i32) -> (i32, i32) {
    %c0_i32 = arith.constant 0 : i32
    %c0_i32_0 = arith.constant 0 : i32
    return %arg0, %c0_i32 : i32, i32
  }
  func.func @transform_1(%arg0: i32) -> (i32, i32) {
    %c0_i32 = arith.constant 0 : i32
    %c0_i32_0 = arith.constant 0 : i32
    %c0_i32_1 = arith.constant 0 : i32
    return %c0_i32, %c0_i32_0 : i32, i32
  }
  func.func @transform_2(%arg0: i32) -> (i32, i32) {
    %c0_i32 = arith.constant 0 : i32
    %c0_i32_0 = arith.constant 0 : i32
    %c0_i32_1 = arith.constant 0 : i32
    return %c0_i32, %c0_i32_0 : i32, i32
  }
  func.func @transform_3(%arg0: i32) -> (i32, i32) {
    %c0_i32 = arith.constant 0 : i32
    %c0_i32_0 = arith.constant 0 : i32
    %c0_i32_1 = arith.constant 0 : i32
    return %c0_i32, %c0_i32_0 : i32, i32
  }
  func.func @transform_4(%arg0: i32) -> (i32, i32) {
    %c0_i32 = arith.constant 0 : i32
    %c0_i32_0 = arith.constant 0 : i32
    %c0_i32_1 = arith.constant 0 : i32
    return %c0_i32, %c0_i32_0 : i32, i32
  }
  func.func @transform_5(%arg0: i32) -> (i32, i32) {
    %c0_i32 = arith.constant 0 : i32
    %c0_i32_0 = arith.constant 0 : i32
    %c0_i32_1 = arith.constant 0 : i32
    return %c0_i32, %c0_i32_0 : i32, i32
  }
  func.func @transform_6(%arg0: i32) -> (i32, i32) {
    %c0_i32 = arith.constant 0 : i32
    %c0_i32_0 = arith.constant 0 : i32
    %c0_i32_1 = arith.constant 0 : i32
    return %c0_i32, %c0_i32_0 : i32, i32
  }
  func.func @transform_7(%arg0: i32) -> (i32, i32) {
    %c0_i32 = arith.constant 0 : i32
    %c0_i32_0 = arith.constant 0 : i32
    return %arg0, %c0_i32 : i32, i32
  }
}

</mosaic_0001>

<bundles_post_ra>
// kernel: tpu_custom_call.1
= control target key start
LH: loop header
LB: loop body
LE: loop exit
PB: predicated region body
PF: predicated region fallthrough
CT: control target
= control target key end

     0   :  { %12 = vsyncpa [#allocation3], 0  ;;  %s1410_s0 = inlined_call_operand.hbm [shape: f32[8,896], index: 0, kind: input, shape index: {}]   ;;  %s1411_s1 = inlined_call_operand.hbm [shape: f32[896,128], index: 1, kind: input, shape index: {}]   ;;  %s1412_s2 = inlined_call_operand.vmem [shape: f32[1,128], index: 2, kind: input, shape index: {}]   ;;  %s1413_s3 = inlined_call_operand.hbm [shape: f32[128,128], index: 3, kind: input, shape index: {}]   ;;  %s1414_s4 = inlined_call_operand.vmem [shape: f32[1,128], index: 4, kind: input, shape index: {}]   ;;  %s1415_s5 = inlined_call_operand.hbm [shape: f32[128,128], index: 5, kind: input, shape index: {}]   ;;  %s1416_s6 = inlined_call_operand.vmem [shape: f32[1,128], index: 6, kind: input, shape index: {}]   ;;  %s1417_s7 = inlined_call_operand.hbm [shape: f32[8,128], index: 7, kind: output, shape index: {}]  }
   0x1   :  { %13 = vsyncpa [#allocation6], 0 }
   0x2   :  { %14 = vsyncpa [#allocation9], 0 }
   0x3   :  { %15 = vsyncpa [#allocation4], 0  ;;  %s1252_s24 = smov [#allocation5]   ;;  %s1134_s28 = scalar_lea.hbm %s1411_s1, 14336 }
   0x4   :  { %s31_s25 = sshll.u32 %s1252_s24, 4  ;;  %p1135_p0 = scmp.ne.s32.totalorder %s1411_s1, %s1134_s28  ;;  %s32_s25 = int_to_ptr.vmem [resolvable:$true] %s31_s25 }
   0x5   :  { %p1138_p1 = scmp.lt.u32.totalorder %s1134_s28, %s1411_s1 }
   0x7   :  { %p1140_p2 = pnand %p1138_p1, %p1135_p0 }
   0x9   :  { %1143 = shalt.err (!%p1140_p2)
}
   0xa   :  { %s1144_s10 = scalar_lea.vmem %s32_s25, 14336  ;;  %p1149_p4 = scmp.lt.s32.totalorder %s32_s25, %s32_s25 }
   0xb   :  { %p1145_p3 = scmp.ne.s32.totalorder %s32_s25, %s1144_s10  ;;  %p1150_p5 = scmp.lt.s32.totalorder %s1144_s10, %s1144_s10 }
   0xd   :  { %p1151_p6 = por %p1150_p5, %p1149_p4 }
   0xf   :  { %p1152_p7 = pnand %p1151_p6, %p1145_p3 }
  0x11   :  { %1155 = shalt.err (!%p1152_p7)
}
  0x12   :  { %s1253_s11 = smov 128   ;;  %s1254_s12 = smov 8  }
  0x13   :  { %37 = dma.hbm_to_vmem [thread:$0]  %s1411_s1, 14336, %s32_s25, [#allocation6], %s1253_s11, %s1253_s11, %s1254_s12  }
  0x14   :  { %s1255_s15 = smov [#allocation2]   ;;  %s1256_s17 = smov [#allocation7]  }
  0x15   :  { %s22_s16 = sshll.u32 %s1255_s15, 4  ;;  %s45_s18 = sshll.u32 %s1256_s17, 4  ;;  %s23_s16 = int_to_ptr.vmem [resolvable:$true] %s22_s16  ;;  %s46_s18 = int_to_ptr.vmem [resolvable:$true] %s45_s18 }
  0x16   :  { %s1156_s21 = scalar_lea.hbm %s1410_s0, 896 }
  0x17   :  { %p1157_p8 = scmp.ne.s32.totalorder %s1410_s0, %s1156_s21  ;;  %p1160_p9 = scmp.lt.u32.totalorder %s1156_s21, %s1410_s0 }
  0x19   :  { %p1162_p10 = pnand %p1160_p9, %p1157_p8 }
  0x1b   :  { %1165 = shalt.err (!%p1162_p10)
}
  0x1c   :  { %s1166_s1 = scalar_lea.vmem %s23_s16, 896  ;;  %p1171_p12 = scmp.lt.s32.totalorder %s23_s16, %s23_s16 }
  0x1d   :  { %p1167_p11 = scmp.ne.s32.totalorder %s23_s16, %s1166_s1  ;;  %p1172_p13 = scmp.lt.s32.totalorder %s1166_s1, %s1166_s1 }
  0x1f   :  { %p1173_p0 = por %p1172_p13, %p1171_p12 }
  0x21   :  { %p1174_p1 = pnand %p1173_p0, %p1167_p11 }
  0x23   :  { %1177 = shalt.err (!%p1174_p1)
}
  0x24   :  { %25 = dma.hbm_to_vmem [thread:$0]  %s1410_s0, 896, %s23_s16, [#allocation3]  }
  0x25   :  { %s1178_s30 = scalar_lea.hbm %s1413_s3, 2048 }
  0x26   :  { %p1179_p2 = scmp.ne.s32.totalorder %s1413_s3, %s1178_s30  ;;  %p1182_p3 = scmp.lt.u32.totalorder %s1178_s30, %s1413_s3 }
  0x28   :  { %p1184_p4 = pnand %p1182_p3, %p1179_p2 }
  0x2a   :  { %1187 = shalt.err (!%p1184_p4)
}
  0x2b   :  { %s1188_s14 = scalar_lea.vmem %s46_s18, 2048  ;;  %p1193_p6 = scmp.lt.s32.totalorder %s46_s18, %s46_s18 }
  0x2c   :  { %p1189_p5 = scmp.ne.s32.totalorder %s46_s18, %s1188_s14  ;;  %p1194_p7 = scmp.lt.s32.totalorder %s1188_s14, %s1188_s14 }
  0x2e   :  { %p1195_p8 = por %p1194_p7, %p1193_p6 }
  0x30   :  { %p1196_p9 = pnand %p1195_p8, %p1189_p5 }
  0x32   :  { %1199 = shalt.err (!%p1196_p9)
}
  0x33   :  { %51 = dma.hbm_to_vmem [thread:$0]  %s1413_s3, 2048, %s46_s18, [#allocation6], %s1253_s11, %s1253_s11, %s1254_s12  }
  0x34   :  { %s1257_s16 = smov [#allocation8]   ;;  %s1200_s21 = scalar_lea.hbm %s1415_s5, 2048 }
  0x35   :  { %s59_s17 = sshll.u32 %s1257_s16, 4  ;;  %p1201_p10 = scmp.ne.s32.totalorder %s1415_s5, %s1200_s21  ;;  %s60_s17 = int_to_ptr.vmem [resolvable:$true] %s59_s17 }
  0x36   :  { %p1204_p11 = scmp.lt.u32.totalorder %s1200_s21, %s1415_s5 }
  0x38   :  { %p1206_p12 = pnand %p1204_p11, %p1201_p10 }
  0x3a   :  { %1209 = shalt.err (!%p1206_p12)
}
  0x3b   :  { %s1210_s1 = scalar_lea.vmem %s60_s17, 2048  ;;  %p1215_p0 = scmp.lt.s32.totalorder %s60_s17, %s60_s17 }
  0x3c   :  { %p1211_p13 = scmp.ne.s32.totalorder %s60_s17, %s1210_s1  ;;  %p1216_p1 = scmp.lt.s32.totalorder %s1210_s1, %s1210_s1 }
  0x3e   :  { %p1217_p2 = por %p1216_p1, %p1215_p0 }
  0x40   :  { %p1218_p3 = pnand %p1217_p2, %p1211_p13 }
  0x42   :  { %1221 = shalt.err (!%p1218_p3)
}
  0x43   :  { %65 = dma.hbm_to_vmem [thread:$0]  %s1415_s5, 2048, %s60_s17, [#allocation9], %s1253_s11, %s1253_s11, %s1254_s12  }
  0x44   :  { %1244 = dma.done.wait [#allocation3], 896  }
  0x45   :  { %1245 = vsyncadd [#allocation3], 4294966400 }
  0x46   :  { %1246 = dma.done.wait [#allocation6], 16384  }
  0x47   :  { %1247 = vsyncadd [#allocation6], 4294950912 }
  0x48   :  { %1248 = dma.done.wait [#allocation9], 2048  }
  0x49   :  { %1249 = vsyncadd [#allocation9], 4294965248  ;;  %v103_v0 = vld [vmem:[#allocation5 + $0x80] sm:$0xff]  ;;  %v104_v1 = vld [vmem:[#allocation5 + $0x88] sm:$0xff]  ;;  %vm1259_vm0 = vmmov 0   ;;  %s1261_s28 = smov [#allocation10]  }
  0x4a   :  { %v87_v2 = vld [vmem:[#allocation5] sm:$0xff]  ;;  %v956_v3 = vpack.c.bf16 %v104_v1, %v103_v0  ;;  %v88_v4 = vld [vmem:[#allocation5 + $0x8] sm:$0xff]  ;;  %v105_v11 = vld [vmem:[#allocation5 + $0x90] sm:$0xff]  ;;  %s681_s29 = sshll.u32 %s1261_s28, 4  ;;  %s682_s29 = int_to_ptr.vmem [resolvable:$true] %s681_s29 }
  0x4b   :  { %v135_v5 = vld [vmem:[#allocation5 + $0x180] sm:$0xff]  ;;  %v136_v6 = vld [vmem:[#allocation5 + $0x188] sm:$0xff]  ;;  %v958_v7 = vpack.c.bf16 %v88_v4, %v87_v2  ;;  %v106_v13 = vld [vmem:[#allocation5 + $0x98] sm:$0xff]  ;;  %s1222_s30 = scalar_lea.vmem %s682_s29, 128  ;;  %p1227_p5 = scmp.lt.s32.totalorder %s682_s29, %s682_s29 }
  0x4c   :  { %v988_v8 = vpack.c.bf16 %v136_v6, %v135_v5  ;;  %v119_v9 = vld [vmem:[#allocation5 + $0x100] sm:$0xff]  ;;  %v120_v10 = vld [vmem:[#allocation5 + $0x108] sm:$0xff]  ;;  %957 = vmatprep.subr.bf16.mxu0 %v956_v3  ;;  %v89_v14 = vld [vmem:[#allocation5 + $0x10] sm:$0xff]  ;;  %v960_v16 = vpack.c.bf16 %v106_v13, %v105_v11  ;;  %p1223_p4 = scmp.ne.s32.totalorder %s682_s29, %s1222_s30  ;;  %p1228_p6 = scmp.lt.s32.totalorder %s1222_s30, %s1222_s30 }
  0x4d   :  { %v990_v12 = vpack.c.bf16 %v120_v10, %v119_v9  ;;  %v90_v15 = vld [vmem:[#allocation5 + $0x18] sm:$0xff]  ;;  %959 = vmatpush3.bf16.msra.mxu0 %v958_v7  ;;  %v137_v18 = vld [vmem:[#allocation5 + $0x190] sm:$0xff]  ;;  %v107_v23 = vld [vmem:[#allocation5 + $0xa0] sm:$0xff] }
  0x4e   :  { %989 = vmatprep.subr.bf16.mxu1 %v988_v8  ;;  %v962_v17 = vpack.c.bf16 %v90_v15, %v89_v14  ;;  %v138_v19 = vld [vmem:[#allocation5 + $0x198] sm:$0xff]  ;;  %v121_v20 = vld [vmem:[#allocation5 + $0x110] sm:$0xff]  ;;  %v108_v24 = vld [vmem:[#allocation5 + $0xa8] sm:$0xff]  ;;  %961 = vmatprep.subr.bf16.mxu0 %v960_v16  ;;  %p1229_p7 = por %p1228_p6, %p1227_p5 }
  0x4f   :  { %991 = vmatpush3.bf16.msra.mxu1 %v990_v12  ;;  %v992_v21 = vpack.c.bf16 %v138_v19, %v137_v18  ;;  %v122_v22 = vld [vmem:[#allocation5 + $0x118] sm:$0xff]  ;;  %v964_v26 = vpack.c.bf16 %v108_v24, %v107_v23  ;;  %v91_v27 = vld [vmem:[#allocation5 + $0x20] sm:$0xff]  ;;  %v92_v28 = vld [vmem:[#allocation5 + $0x28] sm:$0xff] }
  0x50   :  { %v994_v25 = vpack.c.bf16 %v122_v22, %v121_v20  ;;  %v139_v29 = vld [vmem:[#allocation5 + $0x1a0] sm:$0xff]  ;;  %v140_v30 = vld [vmem:[#allocation5 + $0x1a8] sm:$0xff]  ;;  %v966_v33 = vpack.c.bf16 %v92_v28, %v91_v27  ;;  %v109_v35 = vld [vmem:[#allocation5 + $0xb0] sm:$0xff]  ;;  %p1230_p8 = pnand %p1229_p7, %p1223_p4 }
  0x51   :  { %993 = vmatprep.subr.bf16.mxu1 %v992_v21  ;;  %v123_v31 = vld [vmem:[#allocation5 + $0x120] sm:$0xff]  ;;  %v124_v32 = vld [vmem:[#allocation5 + $0x128] sm:$0xff]  ;;  %963 = vmatpush3.bf16.msra.mxu0 %v962_v17  ;;  %v996_v34 = vpack.c.bf16 %v140_v30, %v139_v29  ;;  %v110_v36 = vld [vmem:[#allocation5 + $0xb8] sm:$0xff] }
  0x52   :  { %v93_v37 = vld [vmem:[#allocation5 + $0x30] sm:$0xff]  ;;  %965 = vmatprep.subr.bf16.mxu0 %v964_v26  ;;  %v998_v38 = vpack.c.bf16 %v124_v32, %v123_v31  ;;  %v968_v39 = vpack.c.bf16 %v110_v36, %v109_v35  ;;  %v94_v40 = vld [vmem:[#allocation5 + $0x38] sm:$0xff]  ;;  %v111_v46 = vld [vmem:[#allocation5 + $0xc0] sm:$0xff] }
  0x53   :  { %995 = vmatpush3.bf16.msra.mxu1 %v994_v25  ;;  %v141_v41 = vld [vmem:[#allocation5 + $0x1b0] sm:$0xff]  ;;  %v142_v42 = vld [vmem:[#allocation5 + $0x1b8] sm:$0xff]  ;;  %v112_v47 = vld [vmem:[#allocation5 + $0xc8] sm:$0xff]  ;;  %v970_v48 = vpack.c.bf16 %v94_v40, %v93_v37 }
  0x54   :  { %997 = vmatprep.subr.bf16.mxu1 %v996_v34  ;;  %v1000_v43 = vpack.c.bf16 %v142_v42, %v141_v41  ;;  %v125_v44 = vld [vmem:[#allocation5 + $0x130] sm:$0xff]  ;;  %v126_v45 = vld [vmem:[#allocation5 + $0x138] sm:$0xff]  ;;  %v143_v49 = vld [vmem:[#allocation5 + $0x1c0] sm:$0xff]  ;;  %v972_v52 = vpack.c.bf16 %v112_v47, %v111_v46 }
  0x55   :  { %967 = vmatpush3.bf16.msra.mxu0 %v966_v33  ;;  %v144_v50 = vld [vmem:[#allocation5 + $0x1c8] sm:$0xff]  ;;  %v1002_v51 = vpack.c.bf16 %v126_v45, %v125_v44  ;;  %v95_v53 = vld [vmem:[#allocation5 + $0x40] sm:$0xff]  ;;  %v113_v58 = vld [vmem:[#allocation5 + $0xd0] sm:$0xff] }
  0x56   :  { %969 = vmatprep.subr.bf16.mxu0 %v968_v39  ;;  %v96_v54 = vld [vmem:[#allocation5 + $0x48] sm:$0xff]  ;;  %v127_v55 = vld [vmem:[#allocation5 + $0x140] sm:$0xff]  ;;  %v1004_v56 = vpack.c.bf16 %v144_v50, %v143_v49  ;;  %v114_v59 = vld [vmem:[#allocation5 + $0xd8] sm:$0xff] }
  0x57   :  { %999 = vmatpush3.bf16.msra.mxu1 %v998_v38  ;;  %v128_v57 = vld [vmem:[#allocation5 + $0x148] sm:$0xff]  ;;  %v145_v60 = vld [vmem:[#allocation5 + $0x1d0] sm:$0xff]  ;;  %v146_v61 = vld [vmem:[#allocation5 + $0x1d8] sm:$0xff]  ;;  %v974_v62 = vpack.c.bf16 %v96_v54, %v95_v53  ;;  %v976_v0 = vpack.c.bf16 %v114_v59, %v113_v58 }
  0x58   :  { %1001 = vmatprep.subr.bf16.mxu1 %v1000_v43  ;;  %v1006_v63 = vpack.c.bf16 %v128_v57, %v127_v55  ;;  %v97_v1 = vld [vmem:[#allocation5 + $0x50] sm:$0xff]  ;;  %v98_v2 = vld [vmem:[#allocation5 + $0x58] sm:$0xff]  ;;  %v1008_v4 = vpack.c.bf16 %v146_v61, %v145_v60  ;;  %v115_v6 = vld [vmem:[#allocation5 + $0xe0] sm:$0xff] }
  0x59   :  { %971 = vmatpush3.bf16.msra.mxu0 %v970_v48  ;;  %v129_v3 = vld [vmem:[#allocation5 + $0x150] sm:$0xff]  ;;  %v130_v5 = vld [vmem:[#allocation5 + $0x158] sm:$0xff]  ;;  %v116_v7 = vld [vmem:[#allocation5 + $0xe8] sm:$0xff]  ;;  %v978_v10 = vpack.c.bf16 %v98_v2, %v97_v1  ;;  %v1260_v1 = vmov 0.0  }
  0x5a   :  { %973 = vmatprep.subr.bf16.mxu0 %v972_v52  ;;  %v147_v8 = vld [vmem:[#allocation5 + $0x1e0] sm:$0xff]  ;;  %v148_v9 = vld [vmem:[#allocation5 + $0x1e8] sm:$0xff]  ;;  %v81_v12 = vld [vmem:[#allocation2 + $0x8] sm:$0xff]  ;;  %v1010_v13 = vpack.c.bf16 %v130_v5, %v129_v3  ;;  %v980_v14 = vpack.c.bf16 %v116_v7, %v115_v6 }
  0x5b   :  { %1003 = vmatpush3.bf16.msra.mxu1 %v1002_v51  ;;  %v99_v11 = vld [vmem:[#allocation5 + $0x60] sm:$0xff]  ;;  %v100_v15 = vld [vmem:[#allocation5 + $0x68] sm:$0xff]  ;;  %v1012_v18 = vpack.c.bf16 %v148_v9, %v147_v8  ;;  %v117_v19 = vld [vmem:[#allocation5 + $0xf0] sm:$0xff]  ;;  %270 = vmatprep.mubr.f32.mxu0 %v81_v12  ;;  %v1258_v51 = vmov 0.0|0.0  }
  0x5c   :  { %1005 = vmatprep.subr.bf16.mxu1 %v1004_v56  ;;  %v131_v16 = vld [vmem:[#allocation5 + $0x160] sm:$0xff]  ;;  %v132_v17 = vld [vmem:[#allocation5 + $0x168] sm:$0xff]  ;;  %v118_v20 = vld [vmem:[#allocation5 + $0xf8] sm:$0xff]  ;;  %v982_v24 = vpack.c.bf16 %v100_v15, %v99_v11 }
  0x5d   :  { %975 = vmatpush3.bf16.msra.mxu0 %v974_v62  ;;  %v83_v21 = vld [vmem:[#allocation2 + $0x18] sm:$0xff]  ;;  %v149_v22 = vld [vmem:[#allocation5 + $0x1f0] sm:$0xff]  ;;  %v150_v23 = vld [vmem:[#allocation5 + $0x1f8] sm:$0xff]  ;;  %v1014_v25 = vpack.c.bf16 %v132_v17, %v131_v16  ;;  %v984_v26 = vpack.c.bf16 %v118_v20, %v117_v19 }
  0x5e   :  { %977 = vmatprep.subr.bf16.mxu0 %v976_v0  ;;  %340 = vmatprep.mubr.f32.mxu1 %v83_v21  ;;  %v101_v27 = vld [vmem:[#allocation5 + $0x70] sm:$0xff]  ;;  %v102_v28 = vld [vmem:[#allocation5 + $0x78] sm:$0xff]  ;;  %v1016_v30 = vpack.c.bf16 %v150_v23, %v149_v22  ;;  %v167_v32 = vld [vmem:[#allocation5 + $0x280] sm:$0xff] }
  0x5f   :  { %1007 = vmatpush3.bf16.msra.mxu1 %v1006_v63  ;;  %v133_v29 = vld [vmem:[#allocation5 + $0x170] sm:$0xff]  ;;  %v134_v31 = vld [vmem:[#allocation5 + $0x178] sm:$0xff]  ;;  %v168_v33 = vld [vmem:[#allocation5 + $0x288] sm:$0xff]  ;;  %v986_v34 = vpack.c.bf16 %v102_v28, %v101_v27 }
  0x60   :  { %1009 = vmatprep.subr.bf16.mxu1 %v1008_v4  ;;  %v1018_v35 = vpack.c.bf16 %v134_v31, %v133_v29  ;;  %v1020_v36 = vpack.c.bf16 %v168_v33, %v167_v32  ;;  %v151_v37 = vld [vmem:[#allocation5 + $0x200] sm:$0xff]  ;;  %v152_v38 = vld [vmem:[#allocation5 + $0x208] sm:$0xff]  ;;  %v169_v39 = vld [vmem:[#allocation5 + $0x290] sm:$0xff] }
  0x61   :  { %979 = vmatpush3.bf16.msra.mxu0 %v978_v10  ;;  %v170_v40 = vld [vmem:[#allocation5 + $0x298] sm:$0xff]  ;;  %v183_v41 = vld [vmem:[#allocation5 + $0x300] sm:$0xff]  ;;  %v184_v42 = vld [vmem:[#allocation5 + $0x308] sm:$0xff]  ;;  %v1022_v44 = vpack.c.bf16 %v152_v38, %v151_v37 }
  0x62   :  { %981 = vmatprep.subr.bf16.mxu0 %v980_v14  ;;  %v80_v43 = vld [vmem:[#allocation2] sm:$0xff]  ;;  %v82_v45 = vld [vmem:[#allocation2 + $0x10] sm:$0xff]  ;;  %v1024_v46 = vpack.c.bf16 %v170_v40, %v169_v39  ;;  %v153_v47 = vld [vmem:[#allocation5 + $0x210] sm:$0xff]  ;;  %v1053_v49 = vpack.c.bf16 %v184_v42, %v183_v41 }
  0x63   :  { %1011 = vmatpush3.bf16.msra.mxu1 %v1010_v13  ;;  %v154_v48 = vld [vmem:[#allocation5 + $0x218] sm:$0xff]  ;;  %v171_v50 = vld [vmem:[#allocation5 + $0x2a0] sm:$0xff]  ;;  %v172_v52 = vld [vmem:[#allocation5 + $0x2a8] sm:$0xff] }
  0x64   :  { %1013 = vmatprep.subr.bf16.mxu1 %v1012_v18  ;;  %v185_v53 = vld [vmem:[#allocation5 + $0x310] sm:$0xff]  ;;  %v186_v54 = vld [vmem:[#allocation5 + $0x318] sm:$0xff]  ;;  %v1026_v55 = vpack.c.bf16 %v154_v48, %v153_v47  ;;  %v155_v56 = vld [vmem:[#allocation5 + $0x220] sm:$0xff]  ;;  %v1028_v57 = vpack.c.bf16 %v172_v52, %v171_v50 }
  0x65   :  { %983 = vmatpush3.bf16.msra.mxu0 %v982_v24  ;;  %v156_v58 = vld [vmem:[#allocation5 + $0x228] sm:$0xff]  ;;  %v1056_v59 = vpack.c.bf16 %v186_v54, %v185_v53  ;;  %v173_v60 = vld [vmem:[#allocation5 + $0x2b0] sm:$0xff]  ;;  %v174_v61 = vld [vmem:[#allocation5 + $0x2b8] sm:$0xff] }
  0x66   :  { %985 = vmatprep.subr.bf16.mxu0 %v984_v26  ;;  %v187_v62 = vld [vmem:[#allocation5 + $0x320] sm:$0xff]  ;;  %v188_v63 = vld [vmem:[#allocation5 + $0x328] sm:$0xff]  ;;  %v85_v0 = vld [vmem:[#allocation2 + $0x28] sm:$0xff]  ;;  %v1030_v2 = vpack.c.bf16 %v156_v58, %v155_v56  ;;  %v1032_v3 = vpack.c.bf16 %v174_v61, %v173_v60 }
  0x67   :  { %1015 = vmatpush3.bf16.msra.mxu1 %v1014_v25  ;;  %v157_v4 = vld [vmem:[#allocation5 + $0x230] sm:$0xff]  ;;  %v158_v5 = vld [vmem:[#allocation5 + $0x238] sm:$0xff]  ;;  %v1059_v6 = vpack.c.bf16 %v188_v63, %v187_v62  ;;  %v175_v7 = vld [vmem:[#allocation5 + $0x2c0] sm:$0xff] }
  0x68   :  { %1017 = vmatprep.subr.bf16.mxu1 %v1016_v30  ;;  %v176_v8 = vld [vmem:[#allocation5 + $0x2c8] sm:$0xff]  ;;  %v189_v9 = vld [vmem:[#allocation5 + $0x330] sm:$0xff]  ;;  %v190_v10 = vld [vmem:[#allocation5 + $0x338] sm:$0xff]  ;;  %v1034_v11 = vpack.c.bf16 %v158_v5, %v157_v4 }
  0x69   :  { %987 = vmatpush3.bf16.msra.mxu0 %v986_v34  ;;  %v1036_v12 = vpack.c.bf16 %v176_v8, %v175_v7  ;;  %v159_v13 = vld [vmem:[#allocation5 + $0x240] sm:$0xff]  ;;  %v160_v14 = vld [vmem:[#allocation5 + $0x248] sm:$0xff]  ;;  %v1062_v15 = vpack.c.bf16 %v190_v10, %v189_v9  ;;  %v177_v16 = vld [vmem:[#allocation5 + $0x2d0] sm:$0xff] }
  0x6a   :  { %1021 = vmatprep.subr.bf16.mxu0 %v1020_v36  ;;  %v178_v17 = vld [vmem:[#allocation5 + $0x2d8] sm:$0xff]  ;;  %v191_v18 = vld [vmem:[#allocation5 + $0x340] sm:$0xff]  ;;  %v192_v19 = vld [vmem:[#allocation5 + $0x348] sm:$0xff]  ;;  %v1038_v20 = vpack.c.bf16 %v160_v14, %v159_v13 }
  0x6b   :  { %1019 = vmatpush3.bf16.msra.mxu1 %v1018_v35  ;;  %v1040_v21 = vpack.c.bf16 %v178_v17, %v177_v16  ;;  %v161_v22 = vld [vmem:[#allocation5 + $0x250] sm:$0xff]  ;;  %v162_v23 = vld [vmem:[#allocation5 + $0x258] sm:$0xff]  ;;  %v1065_v24 = vpack.c.bf16 %v192_v19, %v191_v18  ;;  %v179_v25 = vld [vmem:[#allocation5 + $0x2e0] sm:$0xff] }
  0x6c   :  { %1052 = vmatprep.subr.bf16.mxu1 %v1258_v51  ;;  %271 = vmatmul.mubr.f32.vlgmr.msra.gmra.mrb[0].mxu0 %v80_v43  ;;  %v180_v26 = vld [vmem:[#allocation5 + $0x2e8] sm:$0xff]  ;;  %v193_v27 = vld [vmem:[#allocation5 + $0x350] sm:$0xff]  ;;  %v194_v28 = vld [vmem:[#allocation5 + $0x358] sm:$0xff]  ;;  %v1042_v29 = vpack.c.bf16 %v162_v23, %v161_v22 }
  0x6d   :  { %1023 = vmatpush3.bf16.msra.mxu0 %v1022_v44  ;;  %410 = vmatprep.mubr.f32.mxu0 %v85_v0  ;;  %v1044_v30 = vpack.c.bf16 %v180_v26, %v179_v25  ;;  %v163_v31 = vld [vmem:[#allocation5 + $0x260] sm:$0xff]  ;;  %v164_v32 = vld [vmem:[#allocation5 + $0x268] sm:$0xff]  ;;  %v1068_v33 = vpack.c.bf16 %v194_v28, %v193_v27  ;;  %v181_v34 = vld [vmem:[#allocation5 + $0x2f0] sm:$0xff] }
  0x6e   :  { %341 = vmatmul.mubr.f32.vlgmr.msra.gmra.mrb[0].mxu1 %v82_v45  ;;  %1025 = vmatprep.subr.bf16.mxu0 %v1024_v46  ;;  %v182_v35 = vld [vmem:[#allocation5 + $0x2f8] sm:$0xff]  ;;  %v195_v36 = vld [vmem:[#allocation5 + $0x360] sm:$0xff]  ;;  %v196_v37 = vld [vmem:[#allocation5 + $0x368] sm:$0xff]  ;;  %v1046_v38 = vpack.c.bf16 %v164_v32, %v163_v31 }
  0x6f   :  { %1054 = vmatpush3.bf16.msra.mxu1 %v1053_v49  ;;  %883 = vmatprep.mubr.msk.f32.mxu1 %vm1259_vm0, %v1260_v1  ;;  %v1048_v39 = vpack.c.bf16 %v182_v35, %v181_v34  ;;  %v165_v40 = vld [vmem:[#allocation5 + $0x270] sm:$0xff]  ;;  %v166_v41 = vld [vmem:[#allocation5 + $0x278] sm:$0xff]  ;;  %v1071_v42 = vpack.c.bf16 %v196_v37, %v195_v36  ;;  %v84_v47 = vld [vmem:[#allocation2 + $0x20] sm:$0xff] }
  0x70   :  { %1055 = vmatprep.subr.bf16.mxu1 %v1258_v51  ;;  %v197_v43 = vld [vmem:[#allocation5 + $0x370] sm:$0xff]  ;;  %v198_v44 = vld [vmem:[#allocation5 + $0x378] sm:$0xff]  ;;  %v1050_v45 = vpack.c.bf16 %v166_v41, %v165_v40  ;;  %v487_v49 = vld [vmem:[#allocation7] sm:$0xff] }
  0x71   :  { %1027 = vmatpush3.bf16.msra.mxu0 %v1026_v55  ;;  %v1074_v46 = vpack.c.bf16 %v198_v44, %v197_v43  ;;  %v86_v48 = vld [vmem:[#allocation2 + $0x30] sm:$0xff]  ;;  %v488_v50 = vld [vmem:[#allocation7 + $0x8] sm:$0xff]  ;;  %v489_v52 = vld [vmem:[#allocation7 + $0x10] sm:$0xff] }
  0x72   :  { %1029 = vmatprep.subr.bf16.mxu0 %v1028_v57  ;;  %v1077_v53 = vpack.c.bf16 %v488_v50, %v487_v49  ;;  %v490_v54 = vld [vmem:[#allocation7 + $0x18] sm:$0xff]  ;;  %v491_v56 = vld [vmem:[#allocation7 + $0x20] sm:$0xff]  ;;  %v492_v57 = vld [vmem:[#allocation7 + $0x28] sm:$0xff] }
  0x73   :  { %1057 = vmatpush3.bf16.msra.mxu1 %v1056_v59  ;;  %v1080_v55 = vpack.c.bf16 %v490_v54, %v489_v52  ;;  %v1083_v58 = vpack.c.bf16 %v492_v57, %v491_v56  ;;  %v493_v59 = vld [vmem:[#allocation7 + $0x30] sm:$0xff]  ;;  %v494_v60 = vld [vmem:[#allocation7 + $0x38] sm:$0xff]  ;;  %v495_v62 = vld [vmem:[#allocation7 + $0x40] sm:$0xff] }
  0x74   :  { %1058 = vmatprep.subr.bf16.mxu1 %v1258_v51  ;;  %v1086_v61 = vpack.c.bf16 %v494_v60, %v493_v59  ;;  %v496_v63 = vld [vmem:[#allocation7 + $0x48] sm:$0xff]  ;;  %v499_v4 = vld [vmem:[#allocation7 + $0x60] sm:$0xff]  ;;  %v501_v7 = vld [vmem:[#allocation7 + $0x70] sm:$0xff] }
  0x75   :  { %1031 = vmatpush3.bf16.msra.mxu0 %v1030_v2  ;;  %v1089_v0 = vpack.c.bf16 %v496_v63, %v495_v62  ;;  %v498_v2 = vld [vmem:[#allocation7 + $0x58] sm:$0xff]  ;;  %v500_v5 = vld [vmem:[#allocation7 + $0x68] sm:$0xff]  ;;  %v581_v10 = vld [vmem:[#allocation8] sm:$0xff] }
  0x76   :  { %1033 = vmatprep.subr.bf16.mxu0 %v1032_v3  ;;  %v502_v8 = vld [vmem:[#allocation7 + $0x78] sm:$0xff]  ;;  %v585_v16 = vld [vmem:[#allocation8 + $0x20] sm:$0xff]  ;;  %v586_v17 = vld [vmem:[#allocation8 + $0x28] sm:$0xff] }
  0x77   :  { %1060 = vmatpush3.bf16.msra.mxu1 %v1059_v6  ;;  %v1095_v6 = vpack.c.bf16 %v500_v5, %v499_v4  ;;  %v1098_v9 = vpack.c.bf16 %v502_v8, %v501_v7  ;;  %v584_v14 = vld [vmem:[#allocation8 + $0x18] sm:$0xff]  ;;  %v1107_v18 = vpack.c.bf16 %v586_v17, %v585_v16  ;;  %v587_v19 = vld [vmem:[#allocation8 + $0x30] sm:$0xff]  ;;  %v589_v22 = vld [vmem:[#allocation8 + $0x40] sm:$0xff] }
  0x78   :  { %1061 = vmatprep.subr.bf16.mxu1 %v1258_v51  ;;  %v590_v23 = vld [vmem:[#allocation8 + $0x48] sm:$0xff]  ;;  %v591_v25 = vld [vmem:[#allocation8 + $0x50] sm:$0xff]  ;;  %v592_v26 = vld [vmem:[#allocation8 + $0x58] sm:$0xff] }
  0x79   :  { %1035 = vmatpush3.bf16.msra.mxu0 %v1034_v11  ;;  %v582_v11 = vld [vmem:[#allocation8 + $0x8] sm:$0xff]  ;;  %v1116_v27 = vpack.c.bf16 %v592_v26, %v591_v25  ;;  %v593_v28 = vld [vmem:[#allocation8 + $0x60] sm:$0xff] }
  0x7a   :  { %1037 = vmatprep.subr.bf16.mxu0 %v1036_v12  ;;  %v583_v12 = vld [vmem:[#allocation8 + $0x10] sm:$0xff]  ;;  %v1101_v13 = vpack.c.bf16 %v582_v11, %v581_v10  ;;  %v692_v32 = vld [vmem:[%s1412_s2] ss:$0 sm:$0xff] }
  0x7b   :  { %1063 = vmatpush3.bf16.msra.mxu1 %v1062_v15  ;;  %v1104_v15 = vpack.c.bf16 %v584_v14, %v583_v12  ;;  %v693_v50 = vld [vmem:[%s1414_s4] ss:$0 sm:$0xff] }
  0x7c   :  { %1064 = vmatprep.subr.bf16.mxu1 %v1258_v51  ;;  %v694_v56 = vld [vmem:[%s1416_s6] ss:$0 sm:$0xff] }
  0x7d   :  { %1039 = vmatpush3.bf16.msra.mxu0 %v1038_v20  ;;  %v588_v20 = vld [vmem:[#allocation8 + $0x38] sm:$0xff] }
  0x7e   :  { %1041 = vmatprep.subr.bf16.mxu0 %v1040_v21  ;;  %v1110_v21 = vpack.c.bf16 %v588_v20, %v587_v19 }
  0x7f   :  { %1066 = vmatpush3.bf16.msra.mxu1 %v1065_v24  ;;  %v1113_v24 = vpack.c.bf16 %v590_v23, %v589_v22 }
  0x80   :  { %1067 = vmatprep.subr.bf16.mxu1 %v1258_v51 }
  0x81   :  { %1043 = vmatpush3.bf16.msra.mxu0 %v1042_v29  ;;  %v594_v29 = vld [vmem:[#allocation8 + $0x68] sm:$0xff] }
  0x82   :  { %1045 = vmatprep.subr.bf16.mxu0 %v1044_v30  ;;  %v1119_v30 = vpack.c.bf16 %v594_v29, %v593_v28 }
  0x83   :  { %1069 = vmatpush3.bf16.msra.mxu1 %v1068_v33 }
  0x84   :  { %1070 = vmatprep.subr.bf16.mxu1 %v1258_v51 }
  0x85   :  { %1047 = vmatpush3.bf16.msra.mxu0 %v1046_v38 }
  0x86   :  { %1049 = vmatprep.subr.bf16.mxu0 %v1048_v39 }
  0x87   :  { %1072 = vmatpush3.bf16.msra.mxu1 %v1071_v42 }
  0x88   :  { %1073 = vmatprep.subr.bf16.mxu1 %v1258_v51 }
  0x89   :  { %1051 = vmatpush3.bf16.msra.mxu0 %v1050_v45 }
  0x8a   :  { %1076 = vmatprep.subr.bf16.mxu0 %v1258_v51 }
  0x8b   :  { %1075 = vmatpush3.bf16.msra.mxu1 %v1074_v46 }
  0x8c   :  { %1100 = vmatprep.subr.bf16.mxu1 %v1258_v51  ;;  %411 = vmatmul.mubr.f32.vlgmr.msra.gmra.mrb[2].mxu0 %v84_v47  ;;  %v595_v47 = vld [vmem:[#allocation8 + $0x70] sm:$0xff] }
  0x8d   :  { %918 = vmatprep.mubr.msk.f32.mxu0 %vm1259_vm0, %v1260_v1  ;;  %1078 = vmatpush3.bf16.msra.mxu0 %v1077_v53 }
  0x8e   :  { %884 = vmatmul.mubr.f32.vlgmr.msra.gmra.mrb[2].mxu1 %v86_v48  ;;  %1079 = vmatprep.subr.bf16.mxu0 %v1258_v51  ;;  %v596_v48 = vld [vmem:[#allocation8 + $0x78] sm:$0xff] }
  0x8f   :  { %953 = vmatprep.mubr.msk.f32.mxu1 %vm1259_vm0, %v1260_v1  ;;  %v497_v1 = vld [vmem:[#allocation7 + $0x50] sm:$0xff]  ;;  %1102 = vmatpush3.bf16.msra.mxu1 %v1101_v13  ;;  %v1122_v49 = vpack.c.bf16 %v596_v48, %v595_v47 }
  0x90   :  { %v1092_v3 = vpack.c.bf16 %v498_v2, %v497_v1  ;;  %1103 = vmatprep.subr.bf16.mxu1 %v1258_v51 }
  0x91   :  { %1081 = vmatpush3.bf16.msra.mxu0 %v1080_v55 }
  0x92   :  { %1082 = vmatprep.subr.bf16.mxu0 %v1258_v51 }
  0x93   :  { %1105 = vmatpush3.bf16.msra.mxu1 %v1104_v15 }
  0x94   :  { %1106 = vmatprep.subr.bf16.mxu1 %v1258_v51 }
  0x95   :  { %1084 = vmatpush3.bf16.msra.mxu0 %v1083_v58 }
  0x96   :  { %1085 = vmatprep.subr.bf16.mxu0 %v1258_v51 }
  0x97   :  { %1108 = vmatpush3.bf16.msra.mxu1 %v1107_v18 }
  0x98   :  { %1109 = vmatprep.subr.bf16.mxu1 %v1258_v51 }
  0x99   :  { %1087 = vmatpush3.bf16.msra.mxu0 %v1086_v61 }
  0x9a   :  { %1088 = vmatprep.subr.bf16.mxu0 %v1258_v51 }
  0x9b   :  { %1111 = vmatpush3.bf16.msra.mxu1 %v1110_v21 }
  0x9c   :  { %1112 = vmatprep.subr.bf16.mxu1 %v1258_v51 }
  0x9d   :  { %1090 = vmatpush3.bf16.msra.mxu0 %v1089_v0 }
  0x9e   :  { %1091 = vmatprep.subr.bf16.mxu0 %v1258_v51 }
  0x9f   :  { %1114 = vmatpush3.bf16.msra.mxu1 %v1113_v24 }
  0xa0   :  { %1115 = vmatprep.subr.bf16.mxu1 %v1258_v51 }
  0xa1   :  { %1093 = vmatpush3.bf16.msra.mxu0 %v1092_v3 }
  0xa2   :  { %1094 = vmatprep.subr.bf16.mxu0 %v1258_v51 }
  0xa3   :  { %1117 = vmatpush3.bf16.msra.mxu1 %v1116_v27 }
  0xa4   :  { %1118 = vmatprep.subr.bf16.mxu1 %v1258_v51 }
  0xa5   :  { %1096 = vmatpush3.bf16.msra.mxu0 %v1095_v6 }
  0xa6   :  { %1097 = vmatprep.subr.bf16.mxu0 %v1258_v51 }
  0xa7   :  { %1120 = vmatpush3.bf16.msra.mxu1 %v1119_v30 }
  0xa8   :  { %1121 = vmatprep.subr.bf16.mxu1 %v1258_v51 }
  0xa9   :  { %1099 = vmatpush3.bf16.msra.mxu0 %v1098_v9 }
  0xab   :  { %1123 = vmatpush3.bf16.msra.mxu1 %v1122_v49 }
 0x13f   :  { %v727_v31 = vpop.f32.mrb[0].mxu0 }
 0x140   :  { %v728_v33 = vpop.f32.mrb[1].mxu0 }
 0x141   :  { %v762_v34 = vpop.f32.mrb[0].mxu1  ;;  %v729_v35 = vadd.f32 %v728_v33, %v727_v31 }
 0x142   :  { %v763_v36 = vpop.f32.mrb[1].mxu1 }
 0x143   :  { %v764_v37 = vadd.f32 %v763_v36, %v762_v34  ;;  %v273_v38 = vadd.f32 %v729_v35, %v692_v32 }
 0x145   :  { %v343_v39 = vadd.f32 %v764_v37, %v273_v38 }
 0x15f   :  { %v797_v40 = vpop.f32.mrb[2].mxu0 }
 0x160   :  { %v798_v41 = vpop.f32.mrb[3].mxu0 }
 0x161   :  { %v482_v42 = vpop.f32.mrb[2].mxu1  ;;  %v799_v43 = vadd.f32 %v798_v41, %v797_v40 }
 0x162   :  { %v885_v44 = vpop.f32.mrb[3].mxu1 }
 0x163   :  { %v413_v45 = vadd.f32 %v799_v43, %v343_v39 }
 0x165   :  { %v483_v46 = vadd.f32 %v482_v42, %v413_v45 }
 0x167   :  { %v486_v51 = vmax.f32 %v483_v46, 0.0 }
 0x169   :  { %919 = vmatmul.mubr.f32.vlgmr.msra.gmra.mrb[4].mxu0 %v486_v51 }
 0x23c   :  { %v576_v52 = vpop.f32.mrb[4].mxu0 }
 0x23d   :  { %v577_v53 = vadd.f32 %v693_v50, %v576_v52  ;;  %v920_v54 = vpop.f32.mrb[5].mxu0 }
 0x23f   :  { %v580_v55 = vmax.f32 %v577_v53, 0.0 }
 0x241   :  { %954 = vmatmul.mubr.f32.vlgmr.msra.gmra.mrb[4].mxu1 %v580_v55 }
 0x314   :  { %v670_v57 = vpop.f32.mrb[4].mxu1 }
 0x315   :  { %v671_v58 = vadd.f32 %v694_v56, %v670_v57  ;;  %v955_v59 = vpop.f32.mrb[5].mxu1 }
 0x317   :  { %674 = vst [vmem:[#allocation10] sm:$0xff] %v671_v58 }
 0x318   :  { %1233 = shalt.err (!%p1230_p8)
}
 0x319   :  { %s1234_s9 = scalar_lea.hbm %s1417_s7, 128 }
 0x31a   :  { %p1235_p9 = scmp.ne.s32.totalorder %s1417_s7, %s1234_s9  ;;  %p1238_p10 = scmp.lt.u32.totalorder %s1234_s9, %s1417_s7 }
 0x31c   :  { %p1240_p11 = pnand %p1238_p10, %p1235_p9 }
 0x31e   :  { %1243 = shalt.err (!%p1240_p11)
}
 0x31f   :  { %684 = dma.vmem_to_hbm [thread:$0]  %s682_s29, 128, %s1417_s7, [#allocation4]  }
 0x320   :  { %1250 = dma.done.wait [#allocation4], 128  }
 0x321   :  { %1251 = vsyncadd [#allocation4], 4294967168 }
 0x322   :  { %688 = vsyncpa [#allocation3], 1 }
 0x323   :  { %689 = vsyncpa [#allocation6], 1 }
 0x324   :  { %690 = vsyncpa [#allocation9], 1 }
 0x325   :  { %691 = vsyncpa [#allocation4], 1 }

</bundles_post_ra>
